<compile_context>
chip_gen: v5e
topology: v5e:2x2
jax: 0.10.0
libtpu: 0.0.40
codegen_flags: <defaults>
</compile_context>

<pallas_src>
import functools

import jax
import jax.numpy as jnp
from jax.experimental import pallas as pl
from jax.experimental.pallas import tpu as pltpu

N_INPUTS = 3 * 9      # 27
N_OUTPUTS = 9
H1, H2, H3 = 128, 256, 128

# Batch tiling policy: one fat block when small (latency-bound), otherwise
# split into >=2 blocks of at most MAX_TILE_B rows (megacore on v7x).
SINGLE_BLOCK_MAX = 1024
MAX_TILE_B = 2048


def _round_up(a, m):
    return (a + m - 1) // m * m


def _policy_mlp_kernel(x_ref,
                       w1_ref, b1_ref,
                       w2_ref, b2_ref,
                       w3_ref, b3_ref,
                       w4_ref, b4_ref,
                       o_ref):
    # bf16 matmul operands, f32 accumulation; bias/ReLU in f32 (v5e-safe).
    x = x_ref[...].astype(jnp.bfloat16)                              # (TB, 27)

    h = jnp.dot(x, w1_ref[...], preferred_element_type=jnp.float32) + b1_ref[...]
    h = jnp.maximum(h, 0.0).astype(jnp.bfloat16)                     # (TB, 128)

    h = jnp.dot(h, w2_ref[...], preferred_element_type=jnp.float32) + b2_ref[...]
    h = jnp.maximum(h, 0.0).astype(jnp.bfloat16)                     # (TB, 256)

    h = jnp.dot(h, w3_ref[...], preferred_element_type=jnp.float32) + b3_ref[...]
    h = jnp.maximum(h, 0.0).astype(jnp.bfloat16)                     # (TB, 128)

    h = jnp.dot(h, w4_ref[...], preferred_element_type=jnp.float32) + b4_ref[...]
    o_ref[...] = jnp.maximum(h, 0.0)                                 # (TB, 9) f32


def prepare_params(params):
    """One-time cast of raw (in,out)/(1,out) f32 params for the kernel.

    Do this once outside the step loop so weights are not re-packed per call.
    No lane padding needed: Mosaic handles the K=27 contraction and the N=9
    output width internally.
    """
    w1 = params["w1"].astype(jnp.bfloat16)        # (27, 128)
    w2 = params["w2"].astype(jnp.bfloat16)        # (128, 256)
    w3 = params["w3"].astype(jnp.bfloat16)        # (256, 128)
    w4 = params["w4"].astype(jnp.bfloat16)        # (128, 9)

    b1 = params["b1"].astype(jnp.float32)         # (1, 128)
    b2 = params["b2"].astype(jnp.float32)         # (1, 256)
    b3 = params["b3"].astype(jnp.float32)         # (1, 256)->(1,256)? no: (1,256) for b2; b3 is (1,128)
    b3 = params["b3"].astype(jnp.float32)         # (1, 128)
    b4 = params["b4"].astype(jnp.float32)         # (1, 9)

    return (w1, b1, w2, b2, w3, b3, w4, b4)


@functools.partial(jax.jit, static_argnames=())
def policy_forward(x, prepared):
    """x: (B, 27) float32.  prepared: output of prepare_params().  -> (B, 9) f32."""
    B = x.shape[0]

    # Batch tiling: small batches -> one block (sublane-rounded); large batches
    # -> >=2 blocks of <= MAX_TILE_B rows so v7x's two TensorCores both work.
    b8 = _round_up(B, 8)
    if b8 <= SINGLE_BLOCK_MAX:
        tile_b = b8
    else:
        tile_b = min(MAX_TILE_B, _round_up(-(-b8 // 2), 8))
    b_pad = _round_up(b8, tile_b)
    n_blocks = b_pad // tile_b

    # Batch-pad only; dtype stays f32 (the bf16 cast happens inside the kernel).
    x_pad = jnp.pad(x, ((0, b_pad - B), (0, 0)))

    w1, b1, w2, b2, w3, b3, w4, b4 = prepared

    const = lambda i: (0, 0)                 # weights/biases resident across tiles
    in_specs = [
        pl.BlockSpec((tile_b, N_INPUTS), lambda i: (i, 0)),          # x
        pl.BlockSpec((N_INPUTS, H1), const), pl.BlockSpec((1, H1), const),
        pl.BlockSpec((H1, H2), const),       pl.BlockSpec((1, H2), const),
        pl.BlockSpec((H2, H3), const),       pl.BlockSpec((1, H3), const),
        pl.BlockSpec((H3, N_OUTPUTS), const), pl.BlockSpec((1, N_OUTPUTS), const),
    ]
    out_spec = pl.BlockSpec((tile_b, N_OUTPUTS), lambda i: (i, 0))

    flops = 2 * b_pad * (N_INPUTS * H1 + H1 * H2 + H2 * H3 + H3 * N_OUTPUTS)
    weight_bytes = 2 * (N_INPUTS * H1 + H1 * H2 + H2 * H3 + H3 * N_OUTPUTS) \
                   + 4 * (H1 + H2 + H3 + N_OUTPUTS)
    bytes_accessed = weight_bytes + 4 * b_pad * N_INPUTS + 4 * b_pad * N_OUTPUTS

    out = pl.pallas_call(
        _policy_mlp_kernel,
        out_shape=jax.ShapeDtypeStruct((b_pad, N_OUTPUTS), jnp.float32),
        grid=(n_blocks,),
        in_specs=in_specs,
        out_specs=out_spec,
        compiler_params=pltpu.CompilerParams(
            dimension_semantics=("parallel",)),
        cost_estimate=pl.CostEstimate(
            flops=flops, transcendentals=0, bytes_accessed=bytes_accessed),
    )(x_pad, w1, b1, w2, b2, w3, b3, w4, b4)

    return out[:B, :]


def init_params(key):
    """Deterministic init mirroring nn.Linear's U(-1/sqrt(fan_in), 1/sqrt(fan_in)).

    PyTorch stores weight as (out, in); we store the transpose (in, out) so the
    kernel computes y = x @ W + b, matching x @ weight.T + bias exactly.
    """
    dims = [(N_INPUTS, H1), (H1, H2), (H2, H3), (H3, N_OUTPUTS)]
    params = {}
    keys = jax.random.split(key, 2 * len(dims))
    for i, (fan_in, fan_out) in enumerate(dims):
        bound = 1.0 / jnp.sqrt(jnp.float32(fan_in))
        w = jax.random.uniform(keys[2 * i], (fan_in, fan_out),
                               minval=-bound, maxval=bound, dtype=jnp.float32)
        b = jax.random.uniform(keys[2 * i + 1], (1, fan_out),
                               minval=-bound, maxval=bound, dtype=jnp.float32)
        params[f"w{i + 1}"] = w
        params[f"b{i + 1}"] = b
    return params


def _reference(x, p):
    # Same bf16-operand / f32-accumulate math as the kernel.  Note: this
    # validates the kernel against its own reduced-precision math; vs a pure
    # f32 torch forward expect ~1e-2 relative differences (fine for argmax).
    rnd = lambda a: a.astype(jnp.bfloat16)
    h = x
    for i in (1, 2, 3, 4):
        h = jnp.dot(rnd(h), rnd(p[f"w{i}"]),
                    preferred_element_type=jnp.float32) + p[f"b{i}"]
        h = jnp.maximum(h, 0.0)
    return h


if __name__ == "__main__":
    key = jax.random.PRNGKey(0)
    pkey, xkey, xkey2 = jax.random.split(key, 3)

    params = init_params(pkey)
    prepared = prepare_params(params)

    # Tic-tac-toe style flattened board state: (batch, 3*9) = (2, 27)
    batch = 2
    x = jax.random.uniform(xkey, (batch, N_INPUTS), dtype=jnp.float32)

    out = policy_forward(x, prepared)
    out = jax.block_until_ready(out)

    assert out.shape == (batch, N_OUTPUTS)
    assert out.dtype == jnp.float32
    assert bool(jnp.all(out >= 0.0))  # final ReLU
    assert bool(jnp.allclose(out, _reference(x, params), atol=1e-2, rtol=1e-2))

    # Larger batch: exercises batch padding and the multi-block grid path
    # (b8 = 2056 > 1024  ->  2 blocks of 1032 rows).
    batch2 = 2056
    x2 = jax.random.uniform(xkey2, (batch2, N_INPUTS), dtype=jnp.float32)
    out2 = jax.block_until_ready(policy_forward(x2, prepared))
    assert out2.shape == (batch2, N_OUTPUTS)
    assert bool(jnp.all(out2 >= 0.0))
    assert bool(jnp.allclose(out2, _reference(x2, params), atol=1e-2, rtol=1e-2))

    # TODO(synk): Policy.act()/valid_actions() are host-side argmax/sort over
    # the 9 logits plus Python control flow; they are not part of forward() and
    # are left to the caller.

    print("KERNEL_OK")
</pallas_src>

<mosaic_0001>
module attributes {stable_mosaic.version = 11 : i64} {
  func.func @_policy_mlp_kernel(%arg0: i32, %arg1: memref<8x27xf32, #tpu.memory_space<vmem>>, %arg2: memref<27x128xbf16, #tpu.memory_space<vmem>>, %arg3: memref<1x128xf32, #tpu.memory_space<vmem>>, %arg4: memref<128x256xbf16, #tpu.memory_space<vmem>>, %arg5: memref<1x256xf32, #tpu.memory_space<vmem>>, %arg6: memref<256x128xbf16, #tpu.memory_space<vmem>>, %arg7: memref<1x128xf32, #tpu.memory_space<vmem>>, %arg8: memref<128x9xbf16, #tpu.memory_space<vmem>>, %arg9: memref<1x9xf32, #tpu.memory_space<vmem>>, %arg10: memref<8x9xf32, #tpu.memory_space<vmem>>) attributes {dimension_semantics = [#tpu.dimension_semantics<parallel>], iteration_bounds = array<i64: 1>, scalar_prefetch = 0 : i64, scratch_operands = 0 : i64, tpu.core_type = #tpu.core_type<tc>, window_params = [{transform_indices = @transform_0, window_bounds = array<i64: 8, 27>}, {pipeline_mode = #tpu.pipeline_mode<synchronous>, transform_indices = @transform_1, window_bounds = array<i64: 27, 128>}, {pipeline_mode = #tpu.pipeline_mode<synchronous>, transform_indices = @transform_2, window_bounds = array<i64: 1, 128>}, {pipeline_mode = #tpu.pipeline_mode<synchronous>, transform_indices = @transform_3, window_bounds = array<i64: 128, 256>}, {pipeline_mode = #tpu.pipeline_mode<synchronous>, transform_indices = @transform_4, window_bounds = array<i64: 1, 256>}, {pipeline_mode = #tpu.pipeline_mode<synchronous>, transform_indices = @transform_5, window_bounds = array<i64: 256, 128>}, {pipeline_mode = #tpu.pipeline_mode<synchronous>, transform_indices = @transform_6, window_bounds = array<i64: 1, 128>}, {pipeline_mode = #tpu.pipeline_mode<synchronous>, transform_indices = @transform_7, window_bounds = array<i64: 128, 9>}, {pipeline_mode = #tpu.pipeline_mode<synchronous>, transform_indices = @transform_8, window_bounds = array<i64: 1, 9>}, {transform_indices = @transform_9, window_bounds = array<i64: 8, 9>}]} {
    %c0 = arith.constant 0 : index
    %c0_0 = arith.constant 0 : index
    %0 = vector.load %arg1[%c0, %c0_0] : memref<8x27xf32, #tpu.memory_space<vmem>>, vector<8x27xf32>
    %1 = arith.truncf %0 : vector<8x27xf32> to vector<8x27xbf16>
    %c0_1 = arith.constant 0 : index
    %c0_2 = arith.constant 0 : index
    %2 = vector.load %arg2[%c0_1, %c0_2] : memref<27x128xbf16, #tpu.memory_space<vmem>>, vector<27x128xbf16>
    %cst = arith.constant dense<0.000000e+00> : vector<8x128xf32>
    %3 = tpu.matmul %1, %2, %cst {dimension_numbers = #tpu.dot_dimension_numbers<[1], [0], [0], [1], [0, 0, 1, 1], [], []>} : vector<8x27xbf16>, vector<27x128xbf16>, vector<8x128xf32> -> vector<8x128xf32>
    %c0_3 = arith.constant 0 : index
    %c0_4 = arith.constant 0 : index
    %4 = vector.load %arg3[%c0_3, %c0_4] : memref<1x128xf32, #tpu.memory_space<vmem>>, vector<1x128xf32>
    %5 = vector.broadcast %4 : vector<1x128xf32> to vector<8x128xf32>
    %6 = arith.addf %3, %5 : vector<8x128xf32>
    %cst_5 = arith.constant 0.000000e+00 : f32
    %7 = vector.broadcast %cst_5 : f32 to vector<8x128xf32>
    %8 = arith.maximumf %6, %7 : vector<8x128xf32>
    %9 = arith.truncf %8 : vector<8x128xf32> to vector<8x128xbf16>
    %c0_6 = arith.constant 0 : index
    %c0_7 = arith.constant 0 : index
    %10 = vector.load %arg4[%c0_6, %c0_7] : memref<128x256xbf16, #tpu.memory_space<vmem>>, vector<128x256xbf16>
    %cst_8 = arith.constant dense<0.000000e+00> : vector<8x256xf32>
    %11 = tpu.matmul %9, %10, %cst_8 {dimension_numbers = #tpu.dot_dimension_numbers<[1], [0], [0], [1], [0, 0, 1, 1], [], []>} : vector<8x128xbf16>, vector<128x256xbf16>, vector<8x256xf32> -> vector<8x256xf32>
    %c0_9 = arith.constant 0 : index
    %c0_10 = arith.constant 0 : index
    %12 = vector.load %arg5[%c0_9, %c0_10] : memref<1x256xf32, #tpu.memory_space<vmem>>, vector<1x256xf32>
    %13 = vector.broadcast %12 : vector<1x256xf32> to vector<8x256xf32>
    %14 = arith.addf %11, %13 : vector<8x256xf32>
    %cst_11 = arith.constant 0.000000e+00 : f32
    %15 = vector.broadcast %cst_11 : f32 to vector<8x256xf32>
    %16 = arith.maximumf %14, %15 : vector<8x256xf32>
    %17 = arith.truncf %16 : vector<8x256xf32> to vector<8x256xbf16>
    %c0_12 = arith.constant 0 : index
    %c0_13 = arith.constant 0 : index
    %18 = vector.load %arg6[%c0_12, %c0_13] : memref<256x128xbf16, #tpu.memory_space<vmem>>, vector<256x128xbf16>
    %cst_14 = arith.constant dense<0.000000e+00> : vector<8x128xf32>
    %19 = tpu.matmul %17, %18, %cst_14 {dimension_numbers = #tpu.dot_dimension_numbers<[1], [0], [0], [1], [0, 0, 1, 1], [], []>} : vector<8x256xbf16>, vector<256x128xbf16>, vector<8x128xf32> -> vector<8x128xf32>
    %c0_15 = arith.constant 0 : index
    %c0_16 = arith.constant 0 : index
    %20 = vector.load %arg7[%c0_15, %c0_16] : memref<1x128xf32, #tpu.memory_space<vmem>>, vector<1x128xf32>
    %21 = vector.broadcast %20 : vector<1x128xf32> to vector<8x128xf32>
    %22 = arith.addf %19, %21 : vector<8x128xf32>
    %cst_17 = arith.constant 0.000000e+00 : f32
    %23 = vector.broadcast %cst_17 : f32 to vector<8x128xf32>
    %24 = arith.maximumf %22, %23 : vector<8x128xf32>
    %25 = arith.truncf %24 : vector<8x128xf32> to vector<8x128xbf16>
    %c0_18 = arith.constant 0 : index
    %c0_19 = arith.constant 0 : index
    %26 = vector.load %arg8[%c0_18, %c0_19] : memref<128x9xbf16, #tpu.memory_space<vmem>>, vector<128x9xbf16>
    %cst_20 = arith.constant dense<0.000000e+00> : vector<8x9xf32>
    %27 = tpu.matmul %25, %26, %cst_20 {dimension_numbers = #tpu.dot_dimension_numbers<[1], [0], [0], [1], [0, 0, 1, 1], [], []>} : vector<8x128xbf16>, vector<128x9xbf16>, vector<8x9xf32> -> vector<8x9xf32>
    %c0_21 = arith.constant 0 : index
    %c0_22 = arith.constant 0 : index
    %28 = vector.load %arg9[%c0_21, %c0_22] : memref<1x9xf32, #tpu.memory_space<vmem>>, vector<1x9xf32>
    %29 = vector.broadcast %28 : vector<1x9xf32> to vector<8x9xf32>
    %30 = arith.addf %27, %29 : vector<8x9xf32>
    %cst_23 = arith.constant 0.000000e+00 : f32
    %31 = vector.broadcast %cst_23 : f32 to vector<8x9xf32>
    %32 = arith.maximumf %30, %31 : vector<8x9xf32>
    %c0_24 = arith.constant 0 : index
    %c0_25 = arith.constant 0 : index
    %33 = vector.load %arg10[%c0_24, %c0_25] : memref<8x9xf32, #tpu.memory_space<vmem>>, vector<8x9xf32>
    tpu.vector_store %arg10[%c0_24, %c0_25], %32 {strides = array<i32>} : memref<8x9xf32, #tpu.memory_space<vmem>>, vector<8x9xf32>,
    return
  }
  func.func @transform_0(%arg0: i32) -> (i32, i32) {
    %c0_i32 = arith.constant 0 : i32
    %c0_i32_0 = arith.constant 0 : i32
    return %arg0, %c0_i32 : i32, i32
  }
  func.func @transform_1(%arg0: i32) -> (i32, i32) {
    %c0_i32 = arith.constant 0 : i32
    %c0_i32_0 = arith.constant 0 : i32
    %c0_i32_1 = arith.constant 0 : i32
    return %c0_i32, %c0_i32_0 : i32, i32
  }
  func.func @transform_2(%arg0: i32) -> (i32, i32) {
    %c0_i32 = arith.constant 0 : i32
    %c0_i32_0 = arith.constant 0 : i32
    %c0_i32_1 = arith.constant 0 : i32
    return %c0_i32, %c0_i32_0 : i32, i32
  }
  func.func @transform_3(%arg0: i32) -> (i32, i32) {
    %c0_i32 = arith.constant 0 : i32
    %c0_i32_0 = arith.constant 0 : i32
    %c0_i32_1 = arith.constant 0 : i32
    return %c0_i32, %c0_i32_0 : i32, i32
  }
  func.func @transform_4(%arg0: i32) -> (i32, i32) {
    %c0_i32 = arith.constant 0 : i32
    %c0_i32_0 = arith.constant 0 : i32
    %c0_i32_1 = arith.constant 0 : i32
    return %c0_i32, %c0_i32_0 : i32, i32
  }
  func.func @transform_5(%arg0: i32) -> (i32, i32) {
    %c0_i32 = arith.constant 0 : i32
    %c0_i32_0 = arith.constant 0 : i32
    %c0_i32_1 = arith.constant 0 : i32
    return %c0_i32, %c0_i32_0 : i32, i32
  }
  func.func @transform_6(%arg0: i32) -> (i32, i32) {
    %c0_i32 = arith.constant 0 : i32
    %c0_i32_0 = arith.constant 0 : i32
    %c0_i32_1 = arith.constant 0 : i32
    return %c0_i32, %c0_i32_0 : i32, i32
  }
  func.func @transform_7(%arg0: i32) -> (i32, i32) {
    %c0_i32 = arith.constant 0 : i32
    %c0_i32_0 = arith.constant 0 : i32
    %c0_i32_1 = arith.constant 0 : i32
    return %c0_i32, %c0_i32_0 : i32, i32
  }
  func.func @transform_8(%arg0: i32) -> (i32, i32) {
    %c0_i32 = arith.constant 0 : i32
    %c0_i32_0 = arith.constant 0 : i32
    %c0_i32_1 = arith.constant 0 : i32
    return %c0_i32, %c0_i32_0 : i32, i32
  }
  func.func @transform_9(%arg0: i32) -> (i32, i32) {
    %c0_i32 = arith.constant 0 : i32
    %c0_i32_0 = arith.constant 0 : i32
    return %arg0, %c0_i32 : i32, i32
  }
}

</mosaic_0001>

<bundles_post_ra>
// kernel: policy_forward.1
= control target key start
LH: loop header
LB: loop body
LE: loop exit
PB: predicated region body
PF: predicated region fallthrough
CT: control target
= control target key end

     0   :  { %14 = vsyncpa [#allocation3], 0  ;;  %s881_s0 = inlined_call_operand.vmem [shape: f32[8,27], index: 0, kind: input, shape index: {}]   ;;  %s882_s1 = inlined_call_operand.vmem [shape: bf16[27,128], index: 1, kind: input, shape index: {}]   ;;  %s883_s2 = inlined_call_operand.vmem [shape: f32[1,128], index: 2, kind: input, shape index: {}]   ;;  %s884_s3 = inlined_call_operand.hbm [shape: bf16[128,256], index: 3, kind: input, shape index: {}]   ;;  %s885_s4 = inlined_call_operand.vmem [shape: f32[1,256], index: 4, kind: input, shape index: {}]   ;;  %s886_s5 = inlined_call_operand.hbm [shape: bf16[256,128], index: 5, kind: input, shape index: {}]   ;;  %s887_s6 = inlined_call_operand.vmem [shape: f32[1,128], index: 6, kind: input, shape index: {}]   ;;  %s888_s7 = inlined_call_operand.vmem [shape: bf16[128,9], index: 7, kind: input, shape index: {}]   ;;  %s889_s8 = inlined_call_operand.vmem [shape: f32[1,9], index: 8, kind: input, shape index: {}]   ;;  %s890_s9 = inlined_call_operand.vmem [shape: f32[8,9], index: 9, kind: output, shape index: {}]  }
   0x1   :  { %s26_s11 = sshll.u32 %s884_s3, 4  ;;  %s27_s11 = int_to_ptr.hbm [resolvable:$true] %s26_s11 }
   0x2   :  { %15 = vsyncpa [#allocation5], 0  ;;  %s767_s12 = smov [#allocation2]   ;;  %s41_s16 = sshll.u32 %s886_s5, 4  ;;  %s42_s16 = int_to_ptr.hbm [resolvable:$true] %s41_s16 }
   0x3   :  { %s28_s13 = sshll.u32 %s767_s12, 4  ;;  %s768_s17 = smov 128   ;;  %s29_s13 = int_to_ptr.vmem [resolvable:$true] %s28_s13 }
   0x4   :  { %s769_s18 = smov 8   ;;  %s770_s19 = smov [#allocation4]  }
   0x5   :  { %34 = dma.hbm_to_vmem [thread:$0]  %s27_s11, 2048, %s29_s13, [#allocation3], %s768_s17, %s768_s17, %s769_s18  }
   0x6   :  { %s43_s20 = sshll.u32 %s770_s19, 4  ;;  %s771_s21 = smov 64   ;;  %s44_s20 = int_to_ptr.vmem [resolvable:$true] %s43_s20 }
   0x7   :  { %s772_s22 = smov 4  }
   0x8   :  { %49 = dma.hbm_to_vmem [thread:$0]  %s42_s16, 2048, %s44_s20, [#allocation5], %s771_s21, %s771_s21, %s772_s22  }
   0x9   :  { %763 = dma.done.wait [#allocation3], 2048  }
   0xa   :  { %764 = vsyncadd [#allocation3], 4294965248 }
   0xb   :  { %765 = dma.done.wait [#allocation5], 2048  }
   0xc   :  { %766 = vsyncadd [#allocation5], 4294965248  ;;  %vm90_vm0 = vcmask 1044480   ;;  %vm91_vm1 = vcmask 1045504   ;;  %v773_v0 = vmov 65535   ;;  %v663_v17 = vld [vmem:[%s882_s1] sm:$0xff] }
   0xd   :  { %v92_v1 = vsel %vm90_vm0, 4294967295, %v773_v0  ;;  %v500_v2 = vld [vmem:[%s882_s1 + $0x8] sm:$0xf]  ;;  %v664_v3 = vld [vmem:[%s882_s1 + $0x8] sm:$0x30]  ;;  %v65_v19 = vld [vmem:[%s881_s0] sm:$0xff] }
   0xe   :  { %v93_v4 = vsel %vm91_vm1, %v92_v1, 0  ;;  %v501_v5 = vor.u32 %v664_v3, %v500_v2  ;;  %v561_v6 = vld [vmem:[#allocation2 + $0x70] sm:$0xf]  ;;  %v680_v7 = vld [vmem:[#allocation2 + $0x74] sm:$0xf0]  ;;  %v66_v25 = vpack.c.bf16 %v65_v19, %v65_v19  ;;  %vm86_vm2 = vcmask 220160  }
   0xf   :  { %v562_v8 = vor.u32 %v680_v7, %v561_v6  ;;  %v679_v9 = vld [vmem:[#allocation2 + $0x74] sm:$0xf]  ;;  %v563_v10 = vld [vmem:[#allocation2 + $0x78] sm:$0xf0]  ;;  %v553_v11 = vld [vmem:[#allocation2 + $0x60] sm:$0xf] }
  0x10   :  { %v95_v12 = vand.u32 %v501_v5, %v93_v4  ;;  %v566_v13 = vor.u32 %v679_v9, %v563_v10  ;;  %v678_v14 = vld [vmem:[#allocation2 + $0x64] sm:$0xf0]  ;;  %v677_v15 = vld [vmem:[#allocation2 + $0x64] sm:$0xf]  ;;  %v555_v16 = vld [vmem:[#allocation2 + $0x68] sm:$0xf0] }
  0x11   :  { %214 = vmatpush.bf16.msra.mxu1 %v562_v8  ;;  %v554_v18 = vor.u32 %v678_v14, %v553_v11  ;;  %v558_v20 = vor.u32 %v677_v15, %v555_v16  ;;  %v545_v21 = vld [vmem:[#allocation2 + $0x50] sm:$0xf]  ;;  %v676_v22 = vld [vmem:[#allocation2 + $0x54] sm:$0xf0]  ;;  %v675_v23 = vld [vmem:[#allocation2 + $0x54] sm:$0xf] }
  0x12   :  { %103 = vmatpush.bf16.msra.mxu0 %v95_v12  ;;  %227 = vmatpush.bf16.msra.mxu2 %v566_v13  ;;  %v547_v24 = vld [vmem:[#allocation2 + $0x58] sm:$0xf0]  ;;  %v546_v26 = vor.u32 %v676_v22, %v545_v21  ;;  %v537_v27 = vld [vmem:[#allocation2 + $0x40] sm:$0xf]  ;;  %v674_v29 = vld [vmem:[#allocation2 + $0x44] sm:$0xf0] }
  0x13   :  { %v550_v28 = vor.u32 %v675_v23, %v547_v24  ;;  %v673_v30 = vld [vmem:[#allocation2 + $0x44] sm:$0xf]  ;;  %v539_v31 = vld [vmem:[#allocation2 + $0x48] sm:$0xf0]  ;;  %v538_v32 = vor.u32 %v674_v29, %v537_v27  ;;  %v529_v34 = vld [vmem:[#allocation2 + $0x30] sm:$0xf] }
  0x14   :  { %v542_v33 = vor.u32 %v673_v30, %v539_v31  ;;  %v672_v35 = vld [vmem:[#allocation2 + $0x34] sm:$0xf0]  ;;  %v671_v36 = vld [vmem:[#allocation2 + $0x34] sm:$0xf]  ;;  %v531_v37 = vld [vmem:[#allocation2 + $0x38] sm:$0xf0] }
  0x15   :  { %215 = vmatpush.bf16.msra.mxu1 %v554_v18  ;;  %v530_v38 = vor.u32 %v672_v35, %v529_v34  ;;  %v534_v39 = vor.u32 %v671_v36, %v531_v37  ;;  %v521_v40 = vld [vmem:[#allocation2 + $0x20] sm:$0xf]  ;;  %v670_v41 = vld [vmem:[#allocation2 + $0x24] sm:$0xf0]  ;;  %v669_v42 = vld [vmem:[#allocation2 + $0x24] sm:$0xf] }
  0x16   :  { %104 = vmatpush.bf16.msra.mxu0 %v663_v17  ;;  %228 = vmatpush.bf16.msra.mxu2 %v558_v20  ;;  %v523_v43 = vld [vmem:[#allocation2 + $0x28] sm:$0xf0]  ;;  %v522_v44 = vor.u32 %v670_v41, %v521_v40  ;;  %v513_v46 = vld [vmem:[#allocation2 + $0x10] sm:$0xf]  ;;  %v668_v47 = vld [vmem:[#allocation2 + $0x14] sm:$0xf0] }
  0x17   :  { %v526_v45 = vor.u32 %v669_v42, %v523_v43  ;;  %v667_v48 = vld [vmem:[#allocation2 + $0x14] sm:$0xf]  ;;  %v514_v49 = vor.u32 %v668_v47, %v513_v46  ;;  %v515_v50 = vld [vmem:[#allocation2 + $0x18] sm:$0xf0]  ;;  %v505_v52 = vld [vmem:[#allocation2] sm:$0xf] }
  0x18   :  { %v518_v51 = vor.u32 %v667_v48, %v515_v50  ;;  %v666_v53 = vld [vmem:[#allocation2 + $0x4] sm:$0xf0]  ;;  %v665_v54 = vld [vmem:[#allocation2 + $0x4] sm:$0xf]  ;;  %v507_v56 = vld [vmem:[#allocation2 + $0x8] sm:$0xf0] }
  0x19   :  { %502 = vmatmul.msk.bf16.vlgmr.msra.gmra.mxu0 %vm86_vm2, %v66_v25  ;;  %216 = vmatpush.bf16.msra.mxu1 %v546_v26  ;;  %v506_v55 = vor.u32 %v666_v53, %v505_v52  ;;  %v510_v57 = vor.u32 %v665_v54, %v507_v56  ;;  %v688_v58 = vld [vmem:[#allocation4 + $0x38] sm:$0xff]  ;;  %v687_v60 = vld [vmem:[#allocation4 + $0x30] sm:$0xff]  ;;  %v686_v62 = vld [vmem:[#allocation4 + $0x28] sm:$0xff]  ;;  %vm486_vm3 = vcmask 72704  }
  0x1a   :  { %229 = vmatpush.bf16.msra.mxu2 %v550_v28  ;;  %v696_v59 = vld [vmem:[#allocation4 + $0x78] sm:$0xff]  ;;  %376 = vmatpush.bf16.msra.mxu3 %v688_v58  ;;  %v695_v61 = vld [vmem:[#allocation4 + $0x70] sm:$0xff]  ;;  %v694_v63 = vld [vmem:[#allocation4 + $0x68] sm:$0xff] }
  0x1b   :  { %389 = vmatpush.bf16.msrb.mxu0 %v696_v59  ;;  %v685_v0 = vld [vmem:[#allocation4 + $0x20] sm:$0xff]  ;;  %v684_v2 = vld [vmem:[#allocation4 + $0x18] sm:$0xff]  ;;  %v683_v4 = vld [vmem:[#allocation4 + $0x10] sm:$0xff] }
  0x1c   :  { %v693_v1 = vld [vmem:[#allocation4 + $0x60] sm:$0xff]  ;;  %v692_v3 = vld [vmem:[#allocation4 + $0x58] sm:$0xff]  ;;  %v682_v11 = vld [vmem:[#allocation4 + $0x8] sm:$0xff] }
  0x1d   :  { %217 = vmatpush.bf16.msra.mxu1 %v538_v32  ;;  %v712_v5 = vld [vmem:[%s883_s2] ss:$0 sm:$0xff]  ;;  %v691_v12 = vld [vmem:[#allocation4 + $0x50] sm:$0xff]  ;;  %v690_v14 = vld [vmem:[#allocation4 + $0x48] sm:$0xff] }
  0x1e   :  { %230 = vmatpush.bf16.msra.mxu2 %v542_v33  ;;  %377 = vmatpush.bf16.msra.mxu3 %v687_v60  ;;  %v681_v13 = vld [vmem:[#allocation4] sm:$0xff]  ;;  %v704_v16 = vld [vmem:[%s888_s7 + $0x38] sm:$0xff]  ;;  %v703_v17 = vld [vmem:[%s888_s7 + $0x30] sm:$0xff] }
  0x1f   :  { %390 = vmatpush.bf16.msrb.mxu0 %v695_v61  ;;  %v689_v15 = vld [vmem:[#allocation4 + $0x40] sm:$0xff]  ;;  %v702_v18 = vld [vmem:[%s888_s7 + $0x28] sm:$0xff]  ;;  %v700_v21 = vld [vmem:[%s888_s7 + $0x18] sm:$0xff] }
  0x20   :  { %v701_v19 = vld [vmem:[%s888_s7 + $0x20] sm:$0xff]  ;;  %v699_v24 = vld [vmem:[%s888_s7 + $0x10] sm:$0xff]  ;;  %v698_v35 = vld [vmem:[%s888_s7 + $0x8] sm:$0xff] }
  0x21   :  { %218 = vmatpush.bf16.msra.mxu1 %v530_v38  ;;  %v128_v20 = vld [vmem:[%s885_s4] sm:$0x3] }
  0x22   :  { %231 = vmatpush.bf16.msra.mxu2 %v534_v39  ;;  %378 = vmatpush.bf16.msra.mxu3 %v686_v62  ;;  %v130_v22 = vperm.slane %v128_v20, 0  ;;  %v131_v27 = vperm.slane %v128_v20, 1  ;;  %v697_v36 = vld [vmem:[%s888_s7] sm:$0xff] }
  0x23   :  { %391 = vmatpush.bf16.msrb.mxu0 %v694_v63  ;;  %v713_v37 = vld [vmem:[%s887_s6] ss:$0 sm:$0xff] }
  0x24   :  { %v714_v46 = vld [vmem:[%s889_s8] ss:$0 sm:$0xff] }
  0x25   :  { %219 = vmatpush.bf16.msra.mxu1 %v522_v44 }
  0x26   :  { %232 = vmatpush.bf16.msra.mxu2 %v526_v45  ;;  %379 = vmatpush.bf16.msra.mxu3 %v685_v0 }
  0x27   :  { %392 = vmatpush.bf16.msrb.mxu0 %v693_v1 }
  0x29   :  { %220 = vmatpush.bf16.msra.mxu1 %v514_v49 }
  0x2a   :  { %233 = vmatpush.bf16.msra.mxu2 %v518_v51  ;;  %380 = vmatpush.bf16.msra.mxu3 %v684_v2 }
  0x2b   :  { %393 = vmatpush.bf16.msrb.mxu0 %v692_v3 }
  0x2d   :  { %221 = vmatpush.bf16.msra.mxu1 %v506_v55 }
  0x2e   :  { %234 = vmatpush.bf16.msra.mxu2 %v510_v57  ;;  %381 = vmatpush.bf16.msra.mxu3 %v683_v4 }
  0x2f   :  { %394 = vmatpush.bf16.msrb.mxu0 %v691_v12 }
  0x31   :  { %472 = vmatpush.bf16.msrb.mxu1 %v704_v16 }
  0x32   :  { %382 = vmatpush.bf16.msra.mxu3 %v682_v11 }
  0x33   :  { %395 = vmatpush.bf16.msrb.mxu0 %v690_v14 }
  0x35   :  { %473 = vmatpush.bf16.msrb.mxu1 %v703_v17 }
  0x36   :  { %383 = vmatpush.bf16.msra.mxu3 %v681_v13 }
  0x37   :  { %396 = vmatpush.bf16.msrb.mxu0 %v689_v15 }
  0x39   :  { %474 = vmatpush.bf16.msrb.mxu1 %v702_v18 }
  0x3d   :  { %475 = vmatpush.bf16.msrb.mxu1 %v701_v19 }
  0x41   :  { %476 = vmatpush.bf16.msrb.mxu1 %v700_v21 }
  0x45   :  { %477 = vmatpush.bf16.msrb.mxu1 %v699_v24 }
  0x49   :  { %478 = vmatpush.bf16.msrb.mxu1 %v698_v35 }
  0x4d   :  { %479 = vmatpush.bf16.msrb.mxu1 %v697_v36 }
  0x96   :  { %v106_v6 = vpop.f32.mrf.mxu0 }
  0x97   :  { %v107_v7 = vadd.f32 %v712_v5, %v106_v6 }
  0x99   :  { %v110_v8 = vmax.f32 %v107_v7, 0.0 }
  0x9b   :  { %v111_v9 = vpack.c.bf16 %v110_v8, %v110_v8 }
  0x9d   :  { %222 = vmatmul.bf16.vlgmr.msra.gmra.mxu1 %v111_v9  ;;  %235 = vmatmul.bf16.vlgmr.msra.gmra.mxu2 %v111_v9 }
  0x9e   :  { %v108_v10 = vpop.f32.mrf.mxu0 }
 0x11a   :  { %v223_v23 = vpop.f32.mrf.mxu1 }
 0x11b   :  { %v224_v25 = vadd.f32 %v223_v23, %v130_v22 }
 0x11d   :  { %v240_v26 = vmax.f32 %v224_v25, 0.0 }
 0x11f   :  { %v242_v28 = vpack.c.bf16 %v240_v26, %v240_v26 }
 0x120   :  { %v236_v29 = vpop.f32.mrf.mxu2 }
 0x121   :  { %v237_v30 = vadd.f32 %v236_v29, %v131_v27  ;;  %384 = vmatmul.bf16.vlgmr.msra.gmra.mxu3 %v242_v28 }
 0x122   :  { %v225_v31 = vpop.f32.mrf.mxu1 }
 0x123   :  { %v241_v32 = vmax.f32 %v237_v30, 0.0 }
 0x125   :  { %v243_v33 = vpack.c.bf16 %v241_v32, %v241_v32 }
 0x127   :  { %397 = vmatmul.bf16.vlgmr.msrb.gmra.mxu0 %v243_v33 }
 0x128   :  { %v238_v34 = vpop.f32.mrf.mxu2 }
 0x1a4   :  { %v385_v38 = vpop.f32.mrf.mxu3  ;;  %v398_v39 = vpop.f32.mrf.mxu0 }
 0x1a5   :  { %v386_v40 = vadd.f32 %v713_v37, %v385_v38 }
 0x1a7   :  { %v399_v41 = vadd.f32 %v398_v39, %v386_v40 }
 0x1a9   :  { %v402_v42 = vmax.f32 %v399_v41, 0.0 }
 0x1ab   :  { %v403_v43 = vpack.c.bf16 %v402_v42, %v402_v42 }
 0x1ac   :  { %v387_v44 = vpop.f32.mrf.mxu3  ;;  %v400_v45 = vpop.f32.mrf.mxu0 }
 0x1ad   :  { %480 = vmatmul.bf16.vlgmr.msrb.gmra.mxu1 %v403_v43 }
 0x22a   :  { %v481_v47 = vpop.f32.mrf.mxu1 }
 0x22b   :  { %v482_v48 = vadd.f32 %v714_v46, %v481_v47 }
 0x22d   :  { %v485_v49 = vmax.f32 %v482_v48, 0.0 }
 0x22f   :  { %487 = vst.msk [vmem:[%s890_s9] sm:$0xff] %vm486_vm3, %v485_v49 }
 0x232   :  { %v483_v50 = vpop.f32.mrf.mxu1 }
 0x233   :  { %492 = vsyncpa [#allocation3], 1 }
 0x234   :  { %493 = vsyncpa [#allocation5], 1 }

</bundles_post_ra>
